<compile_context>
chip_gen: v5e
topology: v5e:2x2
jax: 0.10.0
libtpu: 0.0.40
codegen_flags: <defaults>
</compile_context>

<pallas_src>
import jax
import jax.numpy as jnp
from jax.experimental import pallas as pl
from jax.experimental.pallas import tpu as pltpu


def _torso_gcn_kernel(a_ref, x_ref, p_ref,
                      w1_ref, b1_ref, w2_ref, b2_ref, w3_ref, b3_ref,
                      wl_ref, bl_ref, o_ref):
    """One grid step = TB graphs.

    a_ref : (TB*N, TB*N) block-diagonal normalized adjacency (compute dtype)
    x_ref : (TB*N, Fin)  node features, graph-major rows     (compute dtype)
    p_ref : (TB, TB*N)   mean-pool matrix kron(I_TB, 1/N)    (float32)
    w*_ref: GCN / final-linear weights (compute dtype); b*_ref biases (f32)
    o_ref : (TB, dout_pad) float32, lane-dense output tile
    """
    A = a_ref[...]
    h = x_ref[...]
    cd = h.dtype

    def gcn_relu(h, w_ref, b_ref):
        # GCNConv: A_hat @ (H @ W) + b, then ReLU.  f32 MXU accumulation.
        hw = jnp.dot(h, w_ref[...], preferred_element_type=jnp.float32)
        ah = jnp.dot(A, hw.astype(cd),
                     preferred_element_type=jnp.float32) + b_ref[...]
        return jnp.maximum(ah, 0.0).astype(cd)

    h = gcn_relu(h, w1_ref, b1_ref)   # conv1 + relu
    h = gcn_relu(h, w2_ref, b2_ref)   # conv2 + relu
    h = gcn_relu(h, w3_ref, b3_ref)   # conv3 + relu

    # global_mean_pool over the N nodes of each of the TB graphs (one dot).
    pooled = jnp.dot(p_ref[...], h.astype(jnp.float32),
                     preferred_element_type=jnp.float32)         # (TB, H//4)
    out = jnp.dot(pooled.astype(cd), wl_ref[...],
                  preferred_element_type=jnp.float32) + bl_ref[...]
    o_ref[...] = out                                             # (TB, dout_pad)


def torso_gcn_v3(x, a_hat, params, S, c, *,
                 graphs_per_step=8, compute_dtype=jnp.bfloat16):
    """x: (B, N, Fin) node features; a_hat: (N, N) normalized adjacency."""
    B, N, Fin = x.shape
    w1, b1, w2, b2, w3, b3, wl, bl = params
    dout = 3 * S ** 2 * c
    cd = compute_dtype

    # --- batch tiling: TB graphs per grid step (pad B if needed) -----------
    TB = max(1, min(graphs_per_step, B))
    n_steps = pl.cdiv(B, TB)
    B_pad = n_steps * TB
    if B_pad != B:
        x = jnp.pad(x, ((0, B_pad - B), (0, 0), (0, 0)))
    x_flat = x.reshape(B_pad * N, Fin).astype(cd)       # graph-major rows

    # Block-diagonal adjacency for TB graphs sharing the same topology, and
    # the matching mean-pool matrix (built once, outside the kernel).
    a_blk = jnp.kron(jnp.eye(TB, dtype=jnp.float32), a_hat).astype(cd)
    pool = jnp.kron(jnp.eye(TB, dtype=jnp.float32),
                    jnp.full((1, N), 1.0 / N, jnp.float32))      # (TB, TB*N)

    # Lane-dense output: pad the final linear layer to a multiple of 128.
    dout_pad = pl.cdiv(dout, 128) * 128
    wl_p = jnp.pad(wl, ((0, 0), (0, dout_pad - dout)))
    bl_p = jnp.pad(bl, ((0, 0), (0, dout_pad - dout)))

    cast = lambda a: a.astype(cd)
    const = lambda t: (0, 0)

    out = pl.pallas_call(
        _torso_gcn_kernel,
        out_shape=jax.ShapeDtypeStruct((B_pad, dout_pad), jnp.float32),
        grid=(n_steps,),
        in_specs=[
            pl.BlockSpec((TB * N, TB * N), const),          # A_blk (resident)
            pl.BlockSpec((TB * N, Fin), lambda t: (t, 0)),  # X tile per step
            pl.BlockSpec((TB, TB * N), const),              # mean-pool matrix
            pl.BlockSpec(w1.shape, const), pl.BlockSpec(b1.shape, const),
            pl.BlockSpec(w2.shape, const), pl.BlockSpec(b2.shape, const),
            pl.BlockSpec(w3.shape, const), pl.BlockSpec(b3.shape, const),
            pl.BlockSpec(wl_p.shape, const), pl.BlockSpec(bl_p.shape, const),
        ],
        out_specs=pl.BlockSpec((TB, dout_pad), lambda t: (t, 0)),
        compiler_params=pltpu.CompilerParams(
            dimension_semantics=("parallel",)),
    )(a_blk, x_flat, pool,
      cast(w1), b1, cast(w2), b2, cast(w3), b3, cast(wl_p), bl_p)

    # x.view(batch_size, 3*S**2, c)
    return out[:B, :dout].reshape(B, 3 * S ** 2, c)


def _reference(x, a_hat, params, S, c, compute_dtype=jnp.float32):
    """Pure-JAX mirror of the kernel (same cast points) for sanity checks."""
    cd = compute_dtype
    cast = lambda a: a.astype(cd)
    w1, b1, w2, b2, w3, b3, wl, bl = params
    A = cast(a_hat)
    h = cast(x)                                        # (B, N, Fin)
    for w, b in ((w1, b1), (w2, b2), (w3, b3)):
        hw = jnp.einsum("bnf,fh->bnh", h, cast(w),
                        preferred_element_type=jnp.float32)
        ah = jnp.einsum("nm,bmh->bnh", A, hw.astype(cd),
                        preferred_element_type=jnp.float32) + b
        h = jnp.maximum(ah, 0.0).astype(cd)
    pooled = jnp.mean(h.astype(jnp.float32), axis=1)   # global_mean_pool
    out = jnp.einsum("bh,hd->bd", pooled.astype(cd), cast(wl),
                     preferred_element_type=jnp.float32) + bl
    return out.reshape(x.shape[0], 3 * S ** 2, c)


def _init_params(key, input_dim, hidden_dim, output_dim):
    ks = jax.random.split(key, 4)

    def lin(k, fan_in, fan_out):
        scale = 1.0 / jnp.sqrt(fan_in)
        w = jax.random.uniform(k, (fan_in, fan_out), jnp.float32, -scale, scale)
        b = jnp.zeros((1, fan_out), jnp.float32)
        return w, b

    w1, b1 = lin(ks[0], input_dim, hidden_dim)
    w2, b2 = lin(ks[1], hidden_dim, hidden_dim // 2)
    w3, b3 = lin(ks[2], hidden_dim // 2, hidden_dim // 4)
    wl, bl = lin(ks[3], hidden_dim // 4, output_dim)
    return (w1, b1, w2, b2, w3, b3, wl, bl)


def _ring_adjacency(n):
    """Deterministic ring graph, symmetric-normalized with self-loops (GCN norm)."""
    idx = jnp.arange(n)
    a = (jnp.zeros((n, n))
         .at[idx, (idx + 1) % n].set(1.0)
         .at[(idx + 1) % n, idx].set(1.0))
    a = a + jnp.eye(n)                       # self-loops
    d = a.sum(axis=1)
    dinv = 1.0 / jnp.sqrt(d)
    return (a * dinv[:, None]) * dinv[None, :]


if __name__ == "__main__":
    # Small shapes consistent with the module.
    B = 16          # batch of graphs (2 grid steps of 8 graphs each)
    S = 2           # -> dim1 = 3*S**2 = 12 (also the node count)
    c = 4           # -> dim2 = 4
    input_dim = 8
    hidden_dim = 32
    N = 3 * S ** 2                  # nodes per graph
    output_dim = 3 * S ** 2 * c     # 48

    key = jax.random.PRNGKey(0)
    kx, kp = jax.random.split(key)
    x = jax.random.normal(kx, (B, N, input_dim), jnp.float32)
    a_hat = _ring_adjacency(N).astype(jnp.float32)
    params = _init_params(kp, input_dim, hidden_dim, output_dim)

    # float32 path: tight check of the forward-pass semantics.
    out32 = jax.block_until_ready(
        torso_gcn_v3(x, a_hat, params, S, c,
                     graphs_per_step=8, compute_dtype=jnp.float32))
    ref32 = _reference(x, a_hat, params, S, c, compute_dtype=jnp.float32)
    assert out32.shape == (B, 3 * S ** 2, c), out32.shape
    assert jnp.allclose(out32, ref32, atol=2e-3, rtol=2e-3), "f32 mismatch"

    # bfloat16 matmul operands (native MXU dtype on v6e/v7x), f32 accumulation.
    outbf = jax.block_until_ready(
        torso_gcn_v3(x, a_hat, params, S, c,
                     graphs_per_step=8, compute_dtype=jnp.bfloat16))
    refbf = _reference(x, a_hat, params, S, c, compute_dtype=jnp.bfloat16)
    assert outbf.shape == (B, 3 * S ** 2, c), outbf.shape
    assert jnp.allclose(outbf, refbf, atol=2e-2, rtol=2e-2), "bf16 mismatch"

    print("KERNEL_OK")
</pallas_src>

<mosaic_0001>
module attributes {stable_mosaic.version = 11 : i64} {
  func.func @_torso_gcn_kernel(%arg0: i32, %arg1: memref<96x96xf32, #tpu.memory_space<vmem>>, %arg2: memref<96x8xf32, #tpu.memory_space<vmem>>, %arg3: memref<8x96xf32, #tpu.memory_space<vmem>>, %arg4: memref<8x32xf32, #tpu.memory_space<vmem>>, %arg5: memref<1x32xf32, #tpu.memory_space<vmem>>, %arg6: memref<32x16xf32, #tpu.memory_space<vmem>>, %arg7: memref<1x16xf32, #tpu.memory_space<vmem>>, %arg8: memref<16x8xf32, #tpu.memory_space<vmem>>, %arg9: memref<1x8xf32, #tpu.memory_space<vmem>>, %arg10: memref<8x128xf32, #tpu.memory_space<vmem>>, %arg11: memref<1x128xf32, #tpu.memory_space<vmem>>, %arg12: memref<8x128xf32, #tpu.memory_space<vmem>>) attributes {dimension_semantics = [#tpu.dimension_semantics<parallel>], iteration_bounds = array<i64: 2>, scalar_prefetch = 0 : i64, scratch_operands = 0 : i64, tpu.core_type = #tpu.core_type<tc>, window_params = [{pipeline_mode = #tpu.pipeline_mode<synchronous>, transform_indices = @transform_0, window_bounds = array<i64: 96, 96>}, {transform_indices = @transform_1, window_bounds = array<i64: 96, 8>}, {pipeline_mode = #tpu.pipeline_mode<synchronous>, transform_indices = @transform_2, window_bounds = array<i64: 8, 96>}, {pipeline_mode = #tpu.pipeline_mode<synchronous>, transform_indices = @transform_3, window_bounds = array<i64: 8, 32>}, {pipeline_mode = #tpu.pipeline_mode<synchronous>, transform_indices = @transform_4, window_bounds = array<i64: 1, 32>}, {pipeline_mode = #tpu.pipeline_mode<synchronous>, transform_indices = @transform_5, window_bounds = array<i64: 32, 16>}, {pipeline_mode = #tpu.pipeline_mode<synchronous>, transform_indices = @transform_6, window_bounds = array<i64: 1, 16>}, {pipeline_mode = #tpu.pipeline_mode<synchronous>, transform_indices = @transform_7, window_bounds = array<i64: 16, 8>}, {pipeline_mode = #tpu.pipeline_mode<synchronous>, transform_indices = @transform_8, window_bounds = array<i64: 1, 8>}, {pipeline_mode = #tpu.pipeline_mode<synchronous>, transform_indices = @transform_9, window_bounds = array<i64: 8, 128>}, {pipeline_mode = #tpu.pipeline_mode<synchronous>, transform_indices = @transform_10, window_bounds = array<i64: 1, 128>}, {transform_indices = @transform_11, window_bounds = array<i64: 8, 128>}]} {
    %c0 = arith.constant 0 : index
    %c0_0 = arith.constant 0 : index
    %0 = vector.load %arg1[%c0, %c0_0] : memref<96x96xf32, #tpu.memory_space<vmem>>, vector<96x96xf32>
    %c0_1 = arith.constant 0 : index
    %c0_2 = arith.constant 0 : index
    %1 = vector.load %arg2[%c0_1, %c0_2] : memref<96x8xf32, #tpu.memory_space<vmem>>, vector<96x8xf32>
    %c0_3 = arith.constant 0 : index
    %c0_4 = arith.constant 0 : index
    %2 = vector.load %arg4[%c0_3, %c0_4] : memref<8x32xf32, #tpu.memory_space<vmem>>, vector<8x32xf32>
    %cst = arith.constant dense<0.000000e+00> : vector<96x32xf32>
    %3 = tpu.matmul %1, %2, %cst {dimension_numbers = #tpu.dot_dimension_numbers<[1], [0], [0], [1], [0, 0, 1, 1], [], []>} : vector<96x8xf32>, vector<8x32xf32>, vector<96x32xf32> -> vector<96x32xf32>
    %cst_5 = arith.constant dense<0.000000e+00> : vector<96x32xf32>
    %4 = tpu.matmul %0, %3, %cst_5 {dimension_numbers = #tpu.dot_dimension_numbers<[1], [0], [0], [1], [0, 0, 1, 1], [], []>} : vector<96x96xf32>, vector<96x32xf32>, vector<96x32xf32> -> vector<96x32xf32>
    %c0_6 = arith.constant 0 : index
    %c0_7 = arith.constant 0 : index
    %5 = vector.load %arg5[%c0_6, %c0_7] : memref<1x32xf32, #tpu.memory_space<vmem>>, vector<1x32xf32>
    %6 = vector.broadcast %5 : vector<1x32xf32> to vector<96x32xf32>
    %7 = arith.addf %4, %6 : vector<96x32xf32>
    %cst_8 = arith.constant 0.000000e+00 : f32
    %8 = vector.broadcast %cst_8 : f32 to vector<96x32xf32>
    %9 = arith.maximumf %7, %8 : vector<96x32xf32>
    %c0_9 = arith.constant 0 : index
    %c0_10 = arith.constant 0 : index
    %10 = vector.load %arg6[%c0_9, %c0_10] : memref<32x16xf32, #tpu.memory_space<vmem>>, vector<32x16xf32>
    %cst_11 = arith.constant dense<0.000000e+00> : vector<96x16xf32>
    %11 = tpu.matmul %9, %10, %cst_11 {dimension_numbers = #tpu.dot_dimension_numbers<[1], [0], [0], [1], [0, 0, 1, 1], [], []>} : vector<96x32xf32>, vector<32x16xf32>, vector<96x16xf32> -> vector<96x16xf32>
    %cst_12 = arith.constant dense<0.000000e+00> : vector<96x16xf32>
    %12 = tpu.matmul %0, %11, %cst_12 {dimension_numbers = #tpu.dot_dimension_numbers<[1], [0], [0], [1], [0, 0, 1, 1], [], []>} : vector<96x96xf32>, vector<96x16xf32>, vector<96x16xf32> -> vector<96x16xf32>
    %c0_13 = arith.constant 0 : index
    %c0_14 = arith.constant 0 : index
    %13 = vector.load %arg7[%c0_13, %c0_14] : memref<1x16xf32, #tpu.memory_space<vmem>>, vector<1x16xf32>
    %14 = vector.broadcast %13 : vector<1x16xf32> to vector<96x16xf32>
    %15 = arith.addf %12, %14 : vector<96x16xf32>
    %cst_15 = arith.constant 0.000000e+00 : f32
    %16 = vector.broadcast %cst_15 : f32 to vector<96x16xf32>
    %17 = arith.maximumf %15, %16 : vector<96x16xf32>
    %c0_16 = arith.constant 0 : index
    %c0_17 = arith.constant 0 : index
    %18 = vector.load %arg8[%c0_16, %c0_17] : memref<16x8xf32, #tpu.memory_space<vmem>>, vector<16x8xf32>
    %cst_18 = arith.constant dense<0.000000e+00> : vector<96x8xf32>
    %19 = tpu.matmul %17, %18, %cst_18 {dimension_numbers = #tpu.dot_dimension_numbers<[1], [0], [0], [1], [0, 0, 1, 1], [], []>} : vector<96x16xf32>, vector<16x8xf32>, vector<96x8xf32> -> vector<96x8xf32>
    %cst_19 = arith.constant dense<0.000000e+00> : vector<96x8xf32>
    %20 = tpu.matmul %0, %19, %cst_19 {dimension_numbers = #tpu.dot_dimension_numbers<[1], [0], [0], [1], [0, 0, 1, 1], [], []>} : vector<96x96xf32>, vector<96x8xf32>, vector<96x8xf32> -> vector<96x8xf32>
    %c0_20 = arith.constant 0 : index
    %c0_21 = arith.constant 0 : index
    %21 = vector.load %arg9[%c0_20, %c0_21] : memref<1x8xf32, #tpu.memory_space<vmem>>, vector<1x8xf32>
    %22 = vector.broadcast %21 : vector<1x8xf32> to vector<96x8xf32>
    %23 = arith.addf %20, %22 : vector<96x8xf32>
    %cst_22 = arith.constant 0.000000e+00 : f32
    %24 = vector.broadcast %cst_22 : f32 to vector<96x8xf32>
    %25 = arith.maximumf %23, %24 : vector<96x8xf32>
    %c0_23 = arith.constant 0 : index
    %c0_24 = arith.constant 0 : index
    %26 = vector.load %arg3[%c0_23, %c0_24] : memref<8x96xf32, #tpu.memory_space<vmem>>, vector<8x96xf32>
    %cst_25 = arith.constant dense<0.000000e+00> : vector<8x8xf32>
    %27 = tpu.matmul %26, %25, %cst_25 {dimension_numbers = #tpu.dot_dimension_numbers<[1], [0], [0], [1], [0, 0, 1, 1], [], []>} : vector<8x96xf32>, vector<96x8xf32>, vector<8x8xf32> -> vector<8x8xf32>
    %c0_26 = arith.constant 0 : index
    %c0_27 = arith.constant 0 : index
    %28 = vector.load %arg10[%c0_26, %c0_27] : memref<8x128xf32, #tpu.memory_space<vmem>>, vector<8x128xf32>
    %cst_28 = arith.constant dense<0.000000e+00> : vector<8x128xf32>
    %29 = tpu.matmul %27, %28, %cst_28 {dimension_numbers = #tpu.dot_dimension_numbers<[1], [0], [0], [1], [0, 0, 1, 1], [], []>} : vector<8x8xf32>, vector<8x128xf32>, vector<8x128xf32> -> vector<8x128xf32>
    %c0_29 = arith.constant 0 : index
    %c0_30 = arith.constant 0 : index
    %30 = vector.load %arg11[%c0_29, %c0_30] : memref<1x128xf32, #tpu.memory_space<vmem>>, vector<1x128xf32>
    %31 = vector.broadcast %30 : vector<1x128xf32> to vector<8x128xf32>
    %32 = arith.addf %29, %31 : vector<8x128xf32>
    %c0_31 = arith.constant 0 : index
    %c0_32 = arith.constant 0 : index
    %33 = vector.load %arg12[%c0_31, %c0_32] : memref<8x128xf32, #tpu.memory_space<vmem>>, vector<8x128xf32>
    tpu.vector_store %arg12[%c0_31, %c0_32], %32 {strides = array<i32>} : memref<8x128xf32, #tpu.memory_space<vmem>>, vector<8x128xf32>,
    return
  }
  func.func @transform_0(%arg0: i32) -> (i32, i32) {
    %c0_i32 = arith.constant 0 : i32
    %c0_i32_0 = arith.constant 0 : i32
    %c0_i32_1 = arith.constant 0 : i32
    return %c0_i32, %c0_i32_0 : i32, i32
  }
  func.func @transform_1(%arg0: i32) -> (i32, i32) {
    %c0_i32 = arith.constant 0 : i32
    %c0_i32_0 = arith.constant 0 : i32
    return %arg0, %c0_i32 : i32, i32
  }
  func.func @transform_2(%arg0: i32) -> (i32, i32) {
    %c0_i32 = arith.constant 0 : i32
    %c0_i32_0 = arith.constant 0 : i32
    %c0_i32_1 = arith.constant 0 : i32
    return %c0_i32, %c0_i32_0 : i32, i32
  }
  func.func @transform_3(%arg0: i32) -> (i32, i32) {
    %c0_i32 = arith.constant 0 : i32
    %c0_i32_0 = arith.constant 0 : i32
    %c0_i32_1 = arith.constant 0 : i32
    return %c0_i32, %c0_i32_0 : i32, i32
  }
  func.func @transform_4(%arg0: i32) -> (i32, i32) {
    %c0_i32 = arith.constant 0 : i32
    %c0_i32_0 = arith.constant 0 : i32
    %c0_i32_1 = arith.constant 0 : i32
    return %c0_i32, %c0_i32_0 : i32, i32
  }
  func.func @transform_5(%arg0: i32) -> (i32, i32) {
    %c0_i32 = arith.constant 0 : i32
    %c0_i32_0 = arith.constant 0 : i32
    %c0_i32_1 = arith.constant 0 : i32
    return %c0_i32, %c0_i32_0 : i32, i32
  }
  func.func @transform_6(%arg0: i32) -> (i32, i32) {
    %c0_i32 = arith.constant 0 : i32
    %c0_i32_0 = arith.constant 0 : i32
    %c0_i32_1 = arith.constant 0 : i32
    return %c0_i32, %c0_i32_0 : i32, i32
  }
  func.func @transform_7(%arg0: i32) -> (i32, i32) {
    %c0_i32 = arith.constant 0 : i32
    %c0_i32_0 = arith.constant 0 : i32
    %c0_i32_1 = arith.constant 0 : i32
    return %c0_i32, %c0_i32_0 : i32, i32
  }
  func.func @transform_8(%arg0: i32) -> (i32, i32) {
    %c0_i32 = arith.constant 0 : i32
    %c0_i32_0 = arith.constant 0 : i32
    %c0_i32_1 = arith.constant 0 : i32
    return %c0_i32, %c0_i32_0 : i32, i32
  }
  func.func @transform_9(%arg0: i32) -> (i32, i32) {
    %c0_i32 = arith.constant 0 : i32
    %c0_i32_0 = arith.constant 0 : i32
    %c0_i32_1 = arith.constant 0 : i32
    return %c0_i32, %c0_i32_0 : i32, i32
  }
  func.func @transform_10(%arg0: i32) -> (i32, i32) {
    %c0_i32 = arith.constant 0 : i32
    %c0_i32_0 = arith.constant 0 : i32
    %c0_i32_1 = arith.constant 0 : i32
    return %c0_i32, %c0_i32_0 : i32, i32
  }
  func.func @transform_11(%arg0: i32) -> (i32, i32) {
    %c0_i32 = arith.constant 0 : i32
    %c0_i32_0 = arith.constant 0 : i32
    return %arg0, %c0_i32 : i32, i32
  }
}

</mosaic_0001>

<bundles_post_ra>
// kernel: tpu_custom_call.1
= control target key start
LH: loop header
LB: loop body
LE: loop exit
PB: predicated region body
PF: predicated region fallthrough
CT: control target
= control target key end

     0   :  { %s1621_s0 = inlined_call_operand.vmem [shape: f32[96,96], index: 0, kind: input, shape index: {}]   ;;  %s1622_s1 = inlined_call_operand.vmem [shape: f32[192,8], index: 1, kind: input, shape index: {}]   ;;  %s1623_s2 = inlined_call_operand.vmem [shape: f32[8,96], index: 2, kind: input, shape index: {}]   ;;  %s1624_s3 = inlined_call_operand.vmem [shape: f32[8,32], index: 3, kind: input, shape index: {}]   ;;  %s1625_s4 = inlined_call_operand.vmem [shape: f32[1,32], index: 4, kind: input, shape index: {}]   ;;  %s1626_s5 = inlined_call_operand.vmem [shape: f32[32,16], index: 5, kind: input, shape index: {}]   ;;  %s1627_s6 = inlined_call_operand.vmem [shape: f32[1,16], index: 6, kind: input, shape index: {}]   ;;  %s1628_s7 = inlined_call_operand.vmem [shape: f32[16,8], index: 7, kind: input, shape index: {}]   ;;  %s1629_s8 = inlined_call_operand.vmem [shape: f32[1,8], index: 8, kind: input, shape index: {}]   ;;  %s1630_s9 = inlined_call_operand.vmem [shape: f32[8,128], index: 9, kind: input, shape index: {}]   ;;  %s1631_s10 = inlined_call_operand.vmem [shape: f32[1,128], index: 10, kind: input, shape index: {}]   ;;  %s1632_s11 = inlined_call_operand.hbm [shape: f32[16,128], index: 11, kind: output, shape index: {}]  }
   0x1   :  { %1633 = sst [smem:[#allocation5_spill]] %s1621_s0 }
   0x2   :  { %1634 = sst [smem:[#allocation6_spill]] %s1622_s1 }
   0x3   :  { %1635 = sst [smem:[#allocation7_spill]] %s1623_s2 }
   0x4   :  { %16 = vsyncpa [#allocation3], 0 }
   0x5   :  { %18 = vsyncpa [#allocation3 + $0x1], 0  ;;  %s1328_s17 = smov 0   ;;  %s1330_s18 = smov 0  }
   0x6   :  { %s1332_s19 = smov 0   ;;  %s1334_s20 = smov 0  }
   0x7 LB: > { %s1349_s21 = sadd.s32 4294967295, %s1266_s20   ;;  %s1060_s22 = sadd.s32 4294967294, %s1266_s20   ;;  %s1266_s20 = sphi %s1334_s20, %s1644_s20   ;;  %s1262_s19 = sphi %s1332_s19, %s1643_s19   ;;  %s1258_s18 = sphi %s1330_s18, %s1642_s18   ;;  %s1254_s17 = sphi %s1328_s17, %s1641_s17  }
   0x8   : > { %s1353_s23 = sadd.s32 1, %s1266_s20   ;;  %s267_s24 = sadd.s32 1, %s1262_s19 }
   0x9   : > { %s264_s25 = ssub.s32 %s1266_s20, %s1353_s23  ;;  %p277_p0 = scmp.ne.s32.totalorder %s1262_s19, %s1258_s18 }
   0xa   : > { %p265_p1 = scmp.eq.s32.totalorder %s264_s25, 0  ;;  %p278_p2 = scmp.eq.s32.totalorder %s1349_s21, 1 }
   0xb   : > { %p283_p3 = scmp.ne.s32.totalorder %s1258_s18, %s1254_s17  ;;  %p284_p4 = scmp.eq.s32.totalorder %s1060_s22, 1 }
   0xc   : > { %s1364_s26 = scalar_select %p265_p1, %s1262_s19, %s267_s24  }
   0xd   : > { %p1366_p5 = por %p278_p2, %p277_p0  ;;  %p1370_p6 = por %p284_p4, %p283_p3 }
   0xe   : > { %p1063_p7 = scmp.ge.s32.totalorder %s1266_s20, 1  ;;  %p341_p8 = scmp.lt.s32.totalorder %s1266_s20, 3 }
  0x10   : > { %p342_p9 = pnand %p1063_p7, %p341_p8 }
  0x11   : > { %s381_s12 = smul.u32 (!%p342_p9), 12, %s1349_s21  ;;  %s1638_s1 = sld [smem:[#allocation6_spill]] (!%p342_p9) }
  0x12   : > { %345 = sbr.rel (%p342_p9) target bundleno = 1470 (0x5be), region = 64  ;;  %s1639_s0 = sld [smem:[#allocation5_spill]] (!%p342_p9) }
  0x13   : > { %p382_p10 = scmp.lt.s32.totalorder (!%p342_p9), %s381_s12, 23  ;;  %s1640_s2 = sld [smem:[#allocation7_spill]] (!%p342_p9) }
  0x14   : > { %s1141_s15 = sshll.u32 (!%p342_p9), %s1349_s21, 3  ;;  %s1224_s22 = scalar_lea.hbm (!%p342_p9), %s1632_s11, 16 }
  0x15   : > { %s996_s24 = scalar_lea.hbm (!%p342_p9), %s1632_s11, %s1141_s15 }
  0x17   : > { %v411_v0 = vld [vmem:[%s1624_s3] sm:$0xff]  ;;  %s1646_s12 = smov (!%p382_p10, %s381_s12), 23  ;;  %vm412_vm0 = vcmask 64512   ;;  %vm506_vm1 = vcmask 785408   ;;  %v611_v33 = vld [vmem:[%s1626_s5 + $0x18] sm:$0xff]  ;;  %v610_v38 = vld [vmem:[%s1626_s5 + $0x10] sm:$0xff] }
  0x18   : > { %464 = vmatpush.msra.mxu0 %v411_v0  ;;  %1144 = vmatpush.msra.mxu3 %v411_v0  ;;  %s1065_s13 = sshll.u32 %s1646_s12, 3  ;;  %v1398_v25 = vld [vmem:[%s1639_s0] sm:$0xff]  ;;  %v1405_v26 = vld [vmem:[%s1639_s0 + $0x8] sm:$0xff]  ;;  %v1412_v27 = vld [vmem:[%s1639_s0 + $0x10] sm:$0xff]  ;;  %vm612_vm2 = vcmask 261120   ;;  %vm773_vm3 = vcmask 130048  }
  0x19   : > { %s385_s16 = scalar_lea.vmem %s1638_s1, %s1065_s13  ;;  %v1419_v28 = vld [vmem:[%s1639_s0 + $0x18] sm:$0xff]  ;;  %v1426_v29 = vld [vmem:[%s1639_s0 + $0x20] sm:$0xff]  ;;  %v1433_v30 = vld [vmem:[%s1639_s0 + $0x28] sm:$0xff]  ;;  %1145 = vmatpush.msra.mxu2 %v611_v33  ;;  %s378_s13 = sand.u32 1, %s1258_s18  }
  0x1a   : > { %v399_v1 = vld [vmem:[%s385_s16] sm:$0xff]  ;;  %v400_v3 = vld [vmem:[%s385_s16 + $0x8] sm:$0xff]  ;;  %v401_v5 = vld [vmem:[%s385_s16 + $0x10] sm:$0xff]  ;;  %s1064_s14 = sshll.u32 %s378_s13, 3  ;;  %s986_s1 = scalar_lea.sflag [#allocation3], %s378_s13 }
  0x1b   : > { %v407_v2 = vld [vmem:[%s385_s16 + $0x40] sm:$0xff]  ;;  %1066 = vmatmul.msk.f32.vlgmr.msra.gmra.mxu0 %vm412_vm0, %v399_v1  ;;  %v408_v4 = vld [vmem:[%s385_s16 + $0x48] sm:$0xff]  ;;  %v409_v6 = vld [vmem:[%s385_s16 + $0x50] sm:$0xff]  ;;  %1146 = vmatpush.msra.mxu2 %v610_v38  ;;  %s380_s30 = scalar_lea.vmem [#allocation2], %s1064_s14 }
  0x1c   : > { %1074 = vmatmul.msk.f32.vlgmr.msra.gmra.mxu3 %vm412_vm0, %v407_v2  ;;  %v402_v7 = vld [vmem:[%s385_s16 + $0x18] sm:$0xff]  ;;  %v403_v9 = vld [vmem:[%s385_s16 + $0x20] sm:$0xff]  ;;  %v404_v10 = vld [vmem:[%s385_s16 + $0x28] sm:$0xff]  ;;  %s998_s12 = sshll.u32 %s380_s30, 4  ;;  %s999_s12 = int_to_ptr.vmem [resolvable:$true] %s998_s12 }
  0x1d   : > { %v410_v8 = vld [vmem:[%s385_s16 + $0x58] sm:$0xff]  ;;  %v405_v11 = vld [vmem:[%s385_s16 + $0x30] sm:$0xff]  ;;  %v1457_v34 = vld [vmem:[%s1639_s0 + $0x40] sm:$0xff] }
  0x1e   : > { %v406_v12 = vld [vmem:[%s385_s16 + $0x38] sm:$0xff]  ;;  %v1440_v31 = vld [vmem:[%s1639_s0 + $0x30] sm:$0xff]  ;;  %v1464_v35 = vld [vmem:[%s1639_s0 + $0x48] sm:$0xff] }
  0x1f   : > { %v1447_v32 = vld [vmem:[%s1639_s0 + $0x38] sm:$0xff]  ;;  %v1471_v36 = vld [vmem:[%s1639_s0 + $0x50] sm:$0xff]  ;;  %v609_v39 = vld [vmem:[%s1626_s5 + $0x8] sm:$0xff] }
  0x20   : > { %v1478_v37 = vld [vmem:[%s1639_s0 + $0x58] sm:$0xff]  ;;  %1147 = vmatpush.msra.mxu2 %v609_v39  ;;  %v608_v40 = vld [vmem:[%s1626_s5] sm:$0xff]  ;;  %s1000_s0 = sshll.u32 %s996_s24, 4  ;;  %s1001_s0 = int_to_ptr.hbm [resolvable:$true] %s1000_s0 }
  0x21   : > { %v1200_v41 = vld [vmem:[%s1625_s4] ss:$0 sm:$0xff] }
  0x22   : > { %1148 = vmatpush.msra.mxu2 %v608_v40 }
  0x23   : > { %1067 = vmatmul.msk.f32.gmra.mxu0 %vm412_vm0, %v400_v3 }
  0x24   : > { %1075 = vmatmul.msk.f32.gmra.mxu3 %vm412_vm0, %v408_v4 }
  0x2b   : > { %1068 = vmatmul.msk.f32.gmra.mxu0 %vm412_vm0, %v401_v5 }
  0x2c   : > { %1076 = vmatmul.msk.f32.gmra.mxu3 %vm412_vm0, %v409_v6 }
  0x33   : > { %1069 = vmatmul.msk.f32.gmra.mxu0 %vm412_vm0, %v402_v7 }
  0x34   : > { %1077 = vmatmul.msk.f32.gmra.mxu3 %vm412_vm0, %v410_v8 }
  0x3b   : > { %1070 = vmatmul.msk.f32.gmra.mxu0 %vm412_vm0, %v403_v9 }
  0x43   : > { %1071 = vmatmul.msk.f32.gmra.mxu0 %vm412_vm0, %v404_v10 }
  0x4b   : > { %1072 = vmatmul.msk.f32.gmra.mxu0 %vm412_vm0, %v405_v11 }
  0x53   : > { %1073 = vmatmul.msk.f32.gmra.mxu0 %vm412_vm0, %v406_v12 }
  0x98   : > { %v466_v13 = vpop.f32.mrf.mxu0 }
  0x9f   : > { %v490_v14 = vpop.f32.mrf.mxu3 }
  0xa0   : > { %v469_v15 = vpop.f32.mrf.mxu0 }
  0xa7   : > { %v493_v16 = vpop.f32.mrf.mxu3 }
  0xa8   : > { %v472_v17 = vpop.f32.mrf.mxu0 }
  0xaf   : > { %v496_v18 = vpop.f32.mrf.mxu3 }
  0xb0   : > { %v475_v19 = vpop.f32.mrf.mxu0 }
  0xb7   : > { %v499_v20 = vpop.f32.mrf.mxu3 }
  0xb8   : > { %547 = vmatpush.msra.mxu1 %v499_v20  ;;  %v478_v21 = vpop.f32.mrf.mxu0 }
  0xba   : > { %548 = vmatpush.msra.mxu1 %v496_v18 }
  0xbc   : > { %549 = vmatpush.msra.mxu1 %v493_v16 }
  0xbe   : > { %550 = vmatpush.msra.mxu1 %v490_v14 }
  0xc0   : > { %v481_v22 = vpop.f32.mrf.mxu0 }
  0xc8   : > { %v484_v23 = vpop.f32.mrf.mxu0 }
  0xd0   : > { %v487_v24 = vpop.f32.mrf.mxu0 }
  0xd1   : > { %551 = vmatpush.msra.mxu1 %v487_v24 }
  0xd3   : > { %552 = vmatpush.msra.mxu1 %v484_v23 }
  0xd5   : > { %553 = vmatpush.msra.mxu1 %v481_v22 }
  0xd7   : > { %554 = vmatpush.msra.mxu1 %v478_v21 }
  0xd9   : > { %555 = vmatpush.msra.mxu1 %v475_v19 }
  0xdb   : > { %556 = vmatpush.msra.mxu1 %v472_v17 }
  0xdd   : > { %557 = vmatpush.msra.mxu1 %v469_v15 }
  0xdf   : > { %558 = vmatpush.msra.mxu1 %v466_v13 }
  0xe0   : > { %1078 = vmatmul.msk.f32.vlgmr.msra.gmra.mxu1 %vm506_vm1, %v1398_v25 }
  0xe1   : > { %661 = vmatpush.msrb.mxu1 %v611_v33 }
  0xe3   : > { %662 = vmatpush.msrb.mxu1 %v610_v38  ;;  %v772_v38 = vld [vmem:[%s1628_s7 + $0x8] sm:$0xff] }
  0xe4   : > { %824 = vmatpush.msrb.mxu0 %v772_v38 }
  0xe5   : > { %663 = vmatpush.msrb.mxu1 %v609_v39  ;;  %v771_v39 = vld [vmem:[%s1628_s7] sm:$0xff] }
  0xe6   : > { %825 = vmatpush.msrb.mxu0 %v771_v39 }
  0xe7   : > { %664 = vmatpush.msrb.mxu1 %v608_v40  ;;  %v1201_v40 = vld [vmem:[%s1627_s6] ss:$0 sm:$0xff] }
  0xe8   : > { %1079 = vmatmul.msk.f32.gmra.mxu1 %vm506_vm1, %v1405_v26 }
  0xf0   : > { %1080 = vmatmul.msk.f32.gmra.mxu1 %vm506_vm1, %v1412_v27 }
  0xf8   : > { %1081 = vmatmul.msk.f32.gmra.mxu1 %vm506_vm1, %v1419_v28 }
 0x100   : > { %1082 = vmatmul.msk.f32.gmra.mxu1 %vm506_vm1, %v1426_v29 }
 0x108   : > { %1083 = vmatmul.msk.f32.gmra.mxu1 %vm506_vm1, %v1433_v30 }
 0x110   : > { %1084 = vmatmul.msk.f32.gmra.mxu1 %vm506_vm1, %v1440_v31 }
 0x118   : > { %1085 = vmatmul.msk.f32.gmra.mxu1 %vm506_vm1, %v1447_v32 }
 0x120   : > { %1086 = vmatmul.msk.f32.gmra.mxu1 %vm506_vm1, %v1457_v34 }
 0x128   : > { %1087 = vmatmul.msk.f32.gmra.mxu1 %vm506_vm1, %v1464_v35 }
 0x130   : > { %1088 = vmatmul.msk.f32.gmra.mxu1 %vm506_vm1, %v1471_v36 }
 0x138   : > { %1089 = vmatmul.msk.f32.gmra.mxu1 %vm506_vm1, %v1478_v37 }
 0x15d   : > { %v560_v42 = vpop.f32.mrf.mxu1 }
 0x15e   : > { %v561_v43 = vadd.f32 %v1200_v41, %v560_v42 }
 0x160   : > { %v596_v44 = vmax.f32 %v561_v43, 0.0 }
 0x162   : > { %1090 = vmatmul.msk.f32.vlgmr.msrb.gmra.mxu1 %vm612_vm2, %v596_v44 }
 0x165   : > { %v563_v45 = vpop.f32.mrf.mxu1 }
 0x166   : > { %v564_v46 = vadd.f32 %v1200_v41, %v563_v45 }
 0x168   : > { %v597_v47 = vmax.f32 %v564_v46, 0.0 }
 0x16a   : > { %1091 = vmatmul.msk.f32.gmra.mxu1 %vm612_vm2, %v597_v47 }
 0x16d   : > { %v566_v48 = vpop.f32.mrf.mxu1 }
 0x16e   : > { %v567_v49 = vadd.f32 %v1200_v41, %v566_v48 }
 0x170   : > { %v598_v50 = vmax.f32 %v567_v49, 0.0 }
 0x172   : > { %1092 = vmatmul.msk.f32.gmra.mxu1 %vm612_vm2, %v598_v50 }
 0x175   : > { %v569_v51 = vpop.f32.mrf.mxu1 }
 0x176   : > { %v570_v52 = vadd.f32 %v1200_v41, %v569_v51 }
 0x178   : > { %v599_v53 = vmax.f32 %v570_v52, 0.0 }
 0x17a   : > { %1093 = vmatmul.msk.f32.gmra.mxu1 %vm612_vm2, %v599_v53 }
 0x17d   : > { %v572_v54 = vpop.f32.mrf.mxu1 }
 0x17e   : > { %v573_v55 = vadd.f32 %v1200_v41, %v572_v54 }
 0x180   : > { %v600_v56 = vmax.f32 %v573_v55, 0.0 }
 0x182   : > { %1094 = vmatmul.msk.f32.vlgmr.msra.gmra.mxu2 %vm612_vm2, %v600_v56 }
 0x185   : > { %v575_v57 = vpop.f32.mrf.mxu1 }
 0x186   : > { %v576_v58 = vadd.f32 %v1200_v41, %v575_v57 }
 0x188   : > { %v601_v59 = vmax.f32 %v576_v58, 0.0 }
 0x18a   : > { %1095 = vmatmul.msk.f32.gmra.mxu2 %vm612_vm2, %v601_v59 }
 0x18d   : > { %v578_v60 = vpop.f32.mrf.mxu1 }
 0x18e   : > { %v579_v61 = vadd.f32 %v1200_v41, %v578_v60 }
 0x190   : > { %v602_v62 = vmax.f32 %v579_v61, 0.0 }
 0x192   : > { %1096 = vmatmul.msk.f32.gmra.mxu2 %vm612_vm2, %v602_v62 }
 0x195   : > { %v581_v63 = vpop.f32.mrf.mxu1 }
 0x196   : > { %v582_v0 = vadd.f32 %v1200_v41, %v581_v63 }
 0x198   : > { %v603_v1 = vmax.f32 %v582_v0, 0.0 }
 0x19a   : > { %1097 = vmatmul.msk.f32.gmra.mxu2 %vm612_vm2, %v603_v1 }
 0x19d   : > { %v584_v2 = vpop.f32.mrf.mxu1 }
 0x19e   : > { %v585_v3 = vadd.f32 %v1200_v41, %v584_v2 }
 0x1a0   : > { %v604_v4 = vmax.f32 %v585_v3, 0.0 }
 0x1a2   : > { %1098 = vmatmul.msk.f32.gmra.mxu2 %vm612_vm2, %v604_v4 }
 0x1a5   : > { %v587_v5 = vpop.f32.mrf.mxu1 }
 0x1a6   : > { %v588_v6 = vadd.f32 %v1200_v41, %v587_v5 }
 0x1a8   : > { %v605_v7 = vmax.f32 %v588_v6, 0.0 }
 0x1aa   : > { %1099 = vmatmul.msk.f32.gmra.mxu2 %vm612_vm2, %v605_v7 }
 0x1ad   : > { %v590_v8 = vpop.f32.mrf.mxu1 }
 0x1ae   : > { %v591_v9 = vadd.f32 %v1200_v41, %v590_v8 }
 0x1b0   : > { %v606_v10 = vmax.f32 %v591_v9, 0.0 }
 0x1b2   : > { %1100 = vmatmul.msk.f32.gmra.mxu2 %vm612_vm2, %v606_v10 }
 0x1b5   : > { %v593_v11 = vpop.f32.mrf.mxu1 }
 0x1b6   : > { %v594_v12 = vadd.f32 %v1200_v41, %v593_v11 }
 0x1b8   : > { %v607_v13 = vmax.f32 %v594_v12, 0.0 }
 0x1ba   : > { %1101 = vmatmul.msk.f32.gmra.mxu2 %vm612_vm2, %v607_v13 }
 0x1df   : > { %v666_v20 = vpop.f32.mrf.mxu1 }
 0x1e7   : > { %v669_v22 = vpop.f32.mrf.mxu1 }
 0x1ef   : > { %v672_v24 = vpop.f32.mrf.mxu1 }
 0x1f7   : > { %v675_v33 = vpop.f32.mrf.mxu1 }
 0x205   : > { %v678_v14 = vpop.f32.mrf.mxu2 }
 0x20d   : > { %v681_v15 = vpop.f32.mrf.mxu2 }
 0x215   : > { %v684_v16 = vpop.f32.mrf.mxu2 }
 0x21d   : > { %v687_v17 = vpop.f32.mrf.mxu2 }
 0x225   : > { %v690_v18 = vpop.f32.mrf.mxu2 }
 0x22d   : > { %v693_v19 = vpop.f32.mrf.mxu2 }
 0x235   : > { %v696_v21 = vpop.f32.mrf.mxu2 }
 0x23d   : > { %v699_v23 = vpop.f32.mrf.mxu2 }
 0x23e   : > { %710 = vmatpush.msrb.mxu3 %v699_v23 }
 0x240   : > { %711 = vmatpush.msrb.mxu3 %v696_v21 }
 0x242   : > { %712 = vmatpush.msrb.mxu3 %v693_v19 }
 0x244   : > { %713 = vmatpush.msrb.mxu3 %v690_v18 }
 0x246   : > { %714 = vmatpush.msrb.mxu3 %v687_v17 }
 0x248   : > { %715 = vmatpush.msrb.mxu3 %v684_v16 }
 0x24a   : > { %716 = vmatpush.msrb.mxu3 %v681_v15 }
 0x24c   : > { %717 = vmatpush.msrb.mxu3 %v678_v14 }
 0x24e   : > { %718 = vmatpush.msrb.mxu3 %v675_v33 }
 0x250   : > { %719 = vmatpush.msrb.mxu3 %v672_v24 }
 0x252   : > { %720 = vmatpush.msrb.mxu3 %v669_v22 }
 0x254   : > { %721 = vmatpush.msrb.mxu3 %v666_v20 }
 0x255   : > { %1102 = vmatmul.msk.f32.vlgmr.msrb.gmra.mxu3 %vm506_vm1, %v1398_v25 }
 0x25d   : > { %1103 = vmatmul.msk.f32.gmra.mxu3 %vm506_vm1, %v1405_v26 }
 0x265   : > { %1104 = vmatmul.msk.f32.gmra.mxu3 %vm506_vm1, %v1412_v27 }
 0x26d   : > { %1105 = vmatmul.msk.f32.gmra.mxu3 %vm506_vm1, %v1419_v28 }
 0x275   : > { %1106 = vmatmul.msk.f32.gmra.mxu3 %vm506_vm1, %v1426_v29 }
 0x27d   : > { %1107 = vmatmul.msk.f32.gmra.mxu3 %vm506_vm1, %v1433_v30 }
 0x285   : > { %1108 = vmatmul.msk.f32.gmra.mxu3 %vm506_vm1, %v1440_v31 }
 0x28d   : > { %1109 = vmatmul.msk.f32.gmra.mxu3 %vm506_vm1, %v1447_v32 }
 0x295   : > { %1110 = vmatmul.msk.f32.gmra.mxu3 %vm506_vm1, %v1457_v34 }
 0x29d   : > { %1111 = vmatmul.msk.f32.gmra.mxu3 %vm506_vm1, %v1464_v35 }
 0x2a5   : > { %1112 = vmatmul.msk.f32.gmra.mxu3 %vm506_vm1, %v1471_v36 }
 0x2ad   : > { %1113 = vmatmul.msk.f32.gmra.mxu3 %vm506_vm1, %v1478_v37 }
 0x2d8   : > { %v723_v41 = vpop.f32.mrf.mxu3 }
 0x2d9   : > { %v724_v42 = vadd.f32 %v1201_v40, %v723_v41 }
 0x2db   : > { %v759_v43 = vmax.f32 %v724_v42, 0.0 }
 0x2dd   : > { %1114 = vmatmul.msk.f32.vlgmr.msrb.gmra.mxu0 %vm773_vm3, %v759_v43 }
 0x2e0   : > { %v726_v44 = vpop.f32.mrf.mxu3 }
 0x2e1   : > { %v727_v45 = vadd.f32 %v1201_v40, %v726_v44 }
 0x2e3   : > { %v760_v46 = vmax.f32 %v727_v45, 0.0 }
 0x2e5   : > { %1115 = vmatmul.msk.f32.gmra.mxu0 %vm773_vm3, %v760_v46 }
 0x2e8   : > { %v729_v47 = vpop.f32.mrf.mxu3 }
 0x2e9   : > { %v730_v48 = vadd.f32 %v1201_v40, %v729_v47 }
 0x2eb   : > { %v761_v49 = vmax.f32 %v730_v48, 0.0 }
 0x2ed   : > { %1116 = vmatmul.msk.f32.gmra.mxu0 %vm773_vm3, %v761_v49 }
 0x2f0   : > { %v732_v50 = vpop.f32.mrf.mxu3 }
 0x2f1   : > { %v733_v51 = vadd.f32 %v1201_v40, %v732_v50 }
 0x2f3   : > { %v762_v52 = vmax.f32 %v733_v51, 0.0 }
 0x2f5   : > { %1117 = vmatmul.msk.f32.gmra.mxu0 %vm773_vm3, %v762_v52 }
 0x2f8   : > { %v735_v53 = vpop.f32.mrf.mxu3 }
 0x2f9   : > { %v736_v54 = vadd.f32 %v1201_v40, %v735_v53 }
 0x2fb   : > { %v763_v55 = vmax.f32 %v736_v54, 0.0 }
 0x2fd   : > { %1118 = vmatmul.msk.f32.gmra.mxu0 %vm773_vm3, %v763_v55 }
 0x300   : > { %v738_v56 = vpop.f32.mrf.mxu3 }
 0x301   : > { %v739_v57 = vadd.f32 %v1201_v40, %v738_v56 }
 0x303   : > { %v764_v58 = vmax.f32 %v739_v57, 0.0 }
 0x305   : > { %1119 = vmatmul.msk.f32.gmra.mxu0 %vm773_vm3, %v764_v58 }
 0x308   : > { %v741_v59 = vpop.f32.mrf.mxu3 }
 0x309   : > { %v742_v60 = vadd.f32 %v1201_v40, %v741_v59 }
 0x30b   : > { %v765_v61 = vmax.f32 %v742_v60, 0.0 }
 0x30d   : > { %1120 = vmatmul.msk.f32.gmra.mxu0 %vm773_vm3, %v765_v61 }
 0x310   : > { %v744_v62 = vpop.f32.mrf.mxu3 }
 0x311   : > { %v745_v63 = vadd.f32 %v1201_v40, %v744_v62 }
 0x313   : > { %v766_v0 = vmax.f32 %v745_v63, 0.0  ;;  %v932_v63 = vld [vmem:[%s1640_s2] sm:$0xff]  ;;  %s1218_s2 = sshra.s32 %s1001_s0, 4  ;;  %s1219_s2 = int_to_ptr.hbm [resolvable:$true] %s1218_s2 }
 0x314   : > { %s1220_s21 = scalar_lea.hbm %s1219_s2, 8  ;;  %p1225_p0 = scmp.lt.s32.totalorder %s1219_s2, %s1632_s11 }
 0x315   : > { %1121 = vmatmul.msk.f32.gmra.mxu0 %vm773_vm3, %v766_v0  ;;  %p1221_p11 = scmp.ne.s32.totalorder %s1219_s2, %s1220_s21  ;;  %p1226_p1 = scmp.lt.s32.totalorder %s1224_s22, %s1220_s21 }
 0x317   : > { %p1222_p12 = pnand %p1221_p11, %p1366_p5  ;;  %p1227_p2 = por %p1226_p1, %p1225_p0 }
 0x318   : > { %v747_v1 = vpop.f32.mrf.mxu3 }
 0x319   : > { %v748_v2 = vadd.f32 %v1201_v40, %v747_v1  ;;  %v1203_v1 = vld [vmem:[%s1631_s10] ss:$0 sm:$0xff]  ;;  %p1223_p13 = pneg %p1222_p12 }
 0x31b   : > { %v767_v3 = vmax.f32 %v748_v2, 0.0  ;;  %p1228_p3 = pnand %p1227_p2, %p1223_p13 }
 0x31d   : > { %1122 = vmatmul.msk.f32.gmra.mxu0 %vm773_vm3, %v767_v3 }
 0x320   : > { %v750_v4 = vpop.f32.mrf.mxu3 }
 0x321   : > { %v751_v5 = vadd.f32 %v1201_v40, %v750_v4 }
 0x323   : > { %v768_v6 = vmax.f32 %v751_v5, 0.0 }
 0x325   : > { %1123 = vmatmul.msk.f32.gmra.mxu0 %vm773_vm3, %v768_v6 }
 0x328   : > { %v753_v7 = vpop.f32.mrf.mxu3 }
 0x329   : > { %v754_v8 = vadd.f32 %v1201_v40, %v753_v7 }
 0x32b   : > { %v769_v9 = vmax.f32 %v754_v8, 0.0 }
 0x32d   : > { %1124 = vmatmul.msk.f32.gmra.mxu0 %vm773_vm3, %v769_v9 }
 0x330   : > { %v756_v10 = vpop.f32.mrf.mxu3 }
 0x331   : > { %v757_v11 = vadd.f32 %v1201_v40, %v756_v10 }
 0x333   : > { %v770_v12 = vmax.f32 %v757_v11, 0.0 }
 0x335   : > { %1125 = vmatmul.msk.f32.gmra.mxu0 %vm773_vm3, %v770_v12 }
 0x35a   : > { %v827_v13 = vpop.f32.mrf.mxu0 }
 0x362   : > { %v830_v14 = vpop.f32.mrf.mxu0 }
 0x36a   : > { %v833_v15 = vpop.f32.mrf.mxu0 }
 0x372   : > { %v836_v16 = vpop.f32.mrf.mxu0 }
 0x37a   : > { %v839_v17 = vpop.f32.mrf.mxu0 }
 0x382   : > { %v842_v18 = vpop.f32.mrf.mxu0 }
 0x38a   : > { %v845_v19 = vpop.f32.mrf.mxu0 }
 0x392   : > { %v848_v20 = vpop.f32.mrf.mxu0 }
 0x39a   : > { %v851_v21 = vpop.f32.mrf.mxu0 }
 0x3a2   : > { %v854_v22 = vpop.f32.mrf.mxu0 }
 0x3aa   : > { %v857_v23 = vpop.f32.mrf.mxu0 }
 0x3b2   : > { %v860_v24 = vpop.f32.mrf.mxu0 }
 0x3b3   : > { %871 = vmatpush.msrb.mxu2 %v860_v24  ;;  %1149 = vmatpush.msra.mxu3 %v860_v24 }
 0x3b5   : > { %872 = vmatpush.msrb.mxu2 %v857_v23  ;;  %1150 = vmatpush.msra.mxu3 %v857_v23 }
 0x3b7   : > { %873 = vmatpush.msrb.mxu2 %v854_v22  ;;  %1151 = vmatpush.msra.mxu3 %v854_v22 }
 0x3b9   : > { %874 = vmatpush.msrb.mxu2 %v851_v21  ;;  %1152 = vmatpush.msra.mxu3 %v851_v21 }
 0x3bb   : > { %875 = vmatpush.msrb.mxu2 %v848_v20  ;;  %1153 = vmatpush.msra.mxu3 %v848_v20 }
 0x3bd   : > { %876 = vmatpush.msrb.mxu2 %v845_v19  ;;  %1154 = vmatpush.msra.mxu3 %v845_v19 }
 0x3bf   : > { %877 = vmatpush.msrb.mxu2 %v842_v18  ;;  %1155 = vmatpush.msra.mxu3 %v842_v18 }
 0x3c1   : > { %878 = vmatpush.msrb.mxu2 %v839_v17  ;;  %1156 = vmatpush.msra.mxu3 %v839_v17 }
 0x3c3   : > { %879 = vmatpush.msrb.mxu2 %v836_v16  ;;  %1157 = vmatpush.msra.mxu3 %v836_v16 }
 0x3c5   : > { %880 = vmatpush.msrb.mxu2 %v833_v15  ;;  %1158 = vmatpush.msra.mxu3 %v833_v15 }
 0x3c7   : > { %881 = vmatpush.msrb.mxu2 %v830_v14  ;;  %1159 = vmatpush.msra.mxu3 %v830_v14 }
 0x3c9   : > { %882 = vmatpush.msrb.mxu2 %v827_v13  ;;  %1160 = vmatpush.msra.mxu3 %v827_v13 }
 0x3ca   : > { %1126 = vmatmul.msk.f32.vlgmr.msrb.gmra.mxu2 %vm506_vm1, %v1398_v25  ;;  %1137 = vmatmul.msk.f32.vlgmr.msra.gmra.mxu3 %vm506_vm1, %v1478_v37 }
 0x3d2   : > { %1127 = vmatmul.msk.f32.gmra.mxu2 %vm506_vm1, %v1405_v26 }
 0x3da   : > { %1128 = vmatmul.msk.f32.gmra.mxu2 %vm506_vm1, %v1412_v27 }
 0x3e2   : > { %1129 = vmatmul.msk.f32.gmra.mxu2 %vm506_vm1, %v1419_v28 }
 0x3ea   : > { %1130 = vmatmul.msk.f32.gmra.mxu2 %vm506_vm1, %v1426_v29 }
 0x3f2   : > { %1131 = vmatmul.msk.f32.gmra.mxu2 %vm506_vm1, %v1433_v30 }
 0x3fa   : > { %1132 = vmatmul.msk.f32.gmra.mxu2 %vm506_vm1, %v1440_v31  ;;  %v1202_v31 = vld [vmem:[%s1629_s8] ss:$0 sm:$0xff] }
 0x402   : > { %1133 = vmatmul.msk.f32.gmra.mxu2 %vm506_vm1, %v1447_v32 }
 0x40a   : > { %1134 = vmatmul.msk.f32.gmra.mxu2 %vm506_vm1, %v1457_v34 }
 0x412   : > { %1135 = vmatmul.msk.f32.gmra.mxu2 %vm506_vm1, %v1464_v35 }
 0x41a   : > { %1136 = vmatmul.msk.f32.gmra.mxu2 %vm506_vm1, %v1471_v36  ;;  %v956_v36 = vld [vmem:[%s1630_s9] sm:$0xff] }
 0x41b   : > { %979 = vmatpush.msrb.mxu3 %v956_v36 }
 0x44d   : > { %v884_v25 = vpop.f32.mrf.mxu2  ;;  %v917_v32 = vpop.f32.mrf.mxu3 }
 0x44e   : > { %v918_v37 = vadd.f32 %v1202_v31, %v917_v32  ;;  %v885_v59 = vadd.f32 %v1202_v31, %v884_v25 }
 0x450   : > { %v931_v33 = vmax.f32 %v918_v37, 0.0  ;;  %v920_v62 = vmax.f32 %v885_v59, 0.0 }
 0x452   : > { %940 = vmatpush.msra.mxu1 %v931_v33 }
 0x455   : > { %v887_v26 = vpop.f32.mrf.mxu2 }
 0x456   : > { %v888_v57 = vadd.f32 %v1202_v31, %v887_v26 }
 0x458   : > { %v921_v61 = vmax.f32 %v888_v57, 0.0 }
 0x45d   : > { %v890_v27 = vpop.f32.mrf.mxu2 }
 0x45e   : > { %v891_v55 = vadd.f32 %v1202_v31, %v890_v27 }
 0x460   : > { %v922_v60 = vmax.f32 %v891_v55, 0.0 }
 0x465   : > { %v893_v28 = vpop.f32.mrf.mxu2 }
 0x466   : > { %v894_v53 = vadd.f32 %v1202_v31, %v893_v28 }
 0x468   : > { %v923_v58 = vmax.f32 %v894_v53, 0.0 }
 0x46d   : > { %v896_v29 = vpop.f32.mrf.mxu2 }
 0x46e   : > { %v897_v51 = vadd.f32 %v1202_v31, %v896_v29 }
 0x470   : > { %v924_v56 = vmax.f32 %v897_v51, 0.0 }
 0x475   : > { %v899_v30 = vpop.f32.mrf.mxu2 }
 0x476   : > { %v900_v49 = vadd.f32 %v1202_v31, %v899_v30 }
 0x478   : > { %v925_v54 = vmax.f32 %v900_v49, 0.0 }
 0x47d   : > { %v902_v34 = vpop.f32.mrf.mxu2 }
 0x47e   : > { %v903_v47 = vadd.f32 %v1202_v31, %v902_v34 }
 0x480   : > { %v926_v52 = vmax.f32 %v903_v47, 0.0 }
 0x485   : > { %v905_v38 = vpop.f32.mrf.mxu2 }
 0x486   : > { %v906_v45 = vadd.f32 %v1202_v31, %v905_v38 }
 0x488   : > { %v927_v50 = vmax.f32 %v906_v45, 0.0 }
 0x48d   : > { %v908_v35 = vpop.f32.mrf.mxu2 }
 0x48e   : > { %v909_v43 = vadd.f32 %v1202_v31, %v908_v35 }
 0x490   : > { %v928_v48 = vmax.f32 %v909_v43, 0.0 }
 0x495   : > { %v911_v39 = vpop.f32.mrf.mxu2 }
 0x496   : > { %v912_v41 = vadd.f32 %v1202_v31, %v911_v39 }
 0x498   : > { %v929_v46 = vmax.f32 %v912_v41, 0.0 }
 0x49d   : > { %v914_v40 = vpop.f32.mrf.mxu2 }
 0x49e   : > { %v915_v42 = vadd.f32 %v1202_v31, %v914_v40 }
 0x4a0   : > { %v930_v44 = vmax.f32 %v915_v42, 0.0 }
 0x4a2   : > { %941 = vmatpush.msra.mxu1 %v930_v44 }
 0x4a4   : > { %942 = vmatpush.msra.mxu1 %v929_v46 }
 0x4a6   : > { %943 = vmatpush.msra.mxu1 %v928_v48 }
 0x4a8   : > { %944 = vmatpush.msra.mxu1 %v927_v50 }
 0x4aa   : > { %945 = vmatpush.msra.mxu1 %v926_v52 }
 0x4ac   : > { %946 = vmatpush.msra.mxu1 %v925_v54 }
 0x4ae   : > { %947 = vmatpush.msra.mxu1 %v924_v56 }
 0x4b0   : > { %948 = vmatpush.msra.mxu1 %v923_v58 }
 0x4b2   : > { %949 = vmatpush.msra.mxu1 %v922_v60 }
 0x4b4   : > { %950 = vmatpush.msra.mxu1 %v921_v61 }
 0x4b6   : > { %951 = vmatpush.msra.mxu1 %v920_v62 }
 0x4b7   : > { %1138 = vmatmul.msk.f32.vlgmr.msra.gmra.mxu1 %vm506_vm1, %v932_v63 }
 0x534   : > { %v953_v0 = vpop.f32.mrf.mxu1 }
 0x535   : > { %1139 = vmatmul.msk.f32.vlgmr.msrb.gmra.mxu3 %vm412_vm0, %v953_v0 }
 0x5b8   : > { %v981_v2 = vpop.f32.mrf.mxu3 }
 0x5b9   : > { %v982_v3 = vadd.f32 %v1203_v1, %v981_v2 }
 0x5bb   : > { %984 = vst [vmem:[%s380_s30] sm:$0xff] %v982_v3 }
 0x5bc   : > { %1231 = shalt.err (!%p1228_p3)
}
 0x5bd   : > { %1161 = dma.vmem_to_hbm [thread:$0]  (%p1366_p5), %s999_s12, 128, %s1001_s0, %s986_s1  }
 0x5be PF: > { %p1167_p4 = scmp.ge.s32.totalorder %s1266_s20, 2  ;;  %s1012_s13 = sand.u32 1, %s1254_s17  }
 0x5bf   : > { %s1013_s24 = scalar_lea.sflag [#allocation3], %s1012_s13 }
 0x5c0   : > { %p1164_p7 = pnand %p1167_p4, %p1370_p6 }
 0x5c2   : > { %p1165_p8 = pneg %p1164_p7 }
 0x5c4   : > { %1249 = dma.done.wait (%p1165_p8), %s1013_s24, 128  }
 0x5c5   : > { %1251 = vsyncadd (%p1165_p8), %s1013_s24, 4294967168  ;;  %p21_p9 = scmp.ge.s32.totalorder %s1353_s23, 4   ;;  %s1641_s17 = smov %s1258_s18 }
 0x5c6   : > { %s1642_s18 = smov %s1262_s19  ;;  %s1643_s19 = smov %s1364_s26 }
 0x5c7   : > { %s1644_s20 = smov %s1353_s23  ;;  %23 = sbr.rel (!%p21_p9) target bundleno = 7 (0x7), region = 99 }
 0x5cc   :  { %1019 = vsyncpa [#allocation3], 1 }
 0x5cd   :  { %1021 = vsyncpa [#allocation3 + $0x1], 1 }

</bundles_post_ra>
